<compile_context>
chip_gen: v6e
topology: v6e:2x2x1
jax: 0.10.0
libtpu: 0.0.40
codegen_flags: <defaults>
</compile_context>

<pallas_src>
import functools

import jax
import jax.numpy as jnp
from jax.experimental import pallas as pl
from jax.experimental.pallas import tpu as pltpu


def _maxpool2x2_kernel(W, base_ref, cand_ref, out_ref, idx_ref):
    # cand_ref block: (4, TB, S) -- the 4 window candidates in row-major window
    # order, for TB (n, c) planes, spatial flattened to S = (H/2)*(W/2) lanes.
    a = cand_ref[0]   # value at (2i,   2j)
    b = cand_ref[1]   # value at (2i,   2j+1)
    c = cand_ref[2]   # value at (2i+1, 2j)
    d = cand_ref[3]   # value at (2i+1, 2j+1)

    m = jnp.maximum(jnp.maximum(a, b), jnp.maximum(c, d))

    # Flat index (h*W + w) of the top-left corner of every 2x2 window,
    # precomputed host-side; broadcast once over the TB planes of this block.
    ia = jnp.broadcast_to(base_ref[...], a.shape)   # (2i,   2j)
    ib = ia + 1                                     # (2i,   2j+1)
    ic = ia + W                                     # (2i+1, 2j)
    idd = ia + (W + 1)                              # (2i+1, 2j+1)

    # First occurrence of the max in row-major window order (PyTorch order);
    # `x != x` catches NaN so a NaN window reports its first NaN candidate.
    pick_a = (a == m) | (a != a)
    pick_b = (b == m) | (b != b)
    pick_c = (c == m) | (c != c)
    idx = jnp.where(pick_a, ia,
          jnp.where(pick_b, ib,
          jnp.where(pick_c, ic, idd)))

    out_ref[...] = m
    idx_ref[...] = idx.astype(idx_ref.dtype)


def _pick_batch_tile(nc, s):
    """(n, c)-planes per grid step.

    Keeps the per-step working set (cand + pooled + idx, double buffered) in
    the low-MiB range, keeps the second-minor block dim legal (multiple of 8
    or the full dim), and prefers >= 2 grid steps so v7x can megacore-shard.
    """
    if nc < 8:
        return nc                              # block dim == full dim: legal
    tb = (4 * 1024 * 1024) // (24 * s)         # ~4 MiB logical per grid step
    tb = max(8, min(tb, nc))
    tb -= tb % 8
    if tb == nc and nc >= 16:
        tb = max(8, -(-(nc // 2) // 8) * 8)    # >= 2 (parallel) grid steps
    return tb


@jax.jit
def shrinker_forward(x):
    """x: (N, C, H, W) float. Returns (pooled (N,C,H/2,W/2), indices int32)."""
    N, C, H, W = x.shape
    assert H % 2 == 0 and W % 2 == 0, "MaxPool2d(2,2) needs even H and W"
    Hh, Wh = H // 2, W // 2
    NC, S = N * C, Hh * Wh

    xr = x.reshape(NC, H, W)
    # Space-to-depth of the 2x2 windows, flattened lane-dense: (4, NC, S), in
    # row-major window order (top-left, top-right, bottom-left, bottom-right).
    cand = jnp.stack(
        [xr[:, 0::2, 0::2].reshape(NC, S),
         xr[:, 0::2, 1::2].reshape(NC, S),
         xr[:, 1::2, 0::2].reshape(NC, S),
         xr[:, 1::2, 1::2].reshape(NC, S)],
        axis=0)

    # Flat index of the top-left corner of each window within its H*W plane.
    base = (jnp.arange(Hh, dtype=jnp.int32)[:, None] * (2 * W)
            + jnp.arange(Wh, dtype=jnp.int32)[None, :] * 2).reshape(1, S)

    TB = _pick_batch_tile(NC, S)
    grid = (pl.cdiv(NC, TB),)

    kernel = functools.partial(_maxpool2x2_kernel, W)
    pooled, idx = pl.pallas_call(
        kernel,
        out_shape=(jax.ShapeDtypeStruct((NC, S), x.dtype),
                   jax.ShapeDtypeStruct((NC, S), jnp.int32)),
        grid=grid,
        in_specs=[pl.BlockSpec((1, S), lambda i: (0, 0)),
                  pl.BlockSpec((4, TB, S), lambda i: (0, i, 0))],
        out_specs=(pl.BlockSpec((TB, S), lambda i: (i, 0)),
                   pl.BlockSpec((TB, S), lambda i: (i, 0))),
        compiler_params=pltpu.CompilerParams(
            dimension_semantics=("parallel",),
            vmem_limit_bytes=32 * 1024 * 1024,
            allow_input_fusion=[False, True]),
    )(base, cand)

    return pooled.reshape(N, C, Hh, Wh), idx.reshape(N, C, Hh, Wh)


if __name__ == "__main__":
    # Shrinker has no learned parameters (only MaxPool2d), so nothing to init.
    key = jax.random.PRNGKey(0)
    x = jax.random.normal(key, (2, 4, 16, 16), dtype=jnp.float32)

    pooled, indices = shrinker_forward(x)
    pooled = jax.block_until_ready(pooled)
    indices = jax.block_until_ready(indices)

    # sanity check of pooled values against a plain-JAX reference
    ref = jnp.maximum(jnp.maximum(x[:, :, 0::2, 0::2], x[:, :, 0::2, 1::2]),
                      jnp.maximum(x[:, :, 1::2, 0::2], x[:, :, 1::2, 1::2]))
    assert pooled.shape == (2, 4, 8, 8) and indices.shape == (2, 4, 8, 8)
    assert pooled.dtype == x.dtype and indices.dtype == jnp.int32
    assert jnp.array_equal(pooled, ref)
    # sanity check of indices: gathering with them must reproduce pooled values
    flat = x.reshape(2, 4, 16 * 16)
    gathered = jnp.take_along_axis(flat, indices.reshape(2, 4, -1), axis=-1)
    assert jnp.array_equal(gathered.reshape(pooled.shape), pooled)

    print("KERNEL_OK")
</pallas_src>

<mosaic_0001>
module attributes {stable_mosaic.version = 11 : i64} {
  func.func @_maxpool2x2_kernel(%arg0: i32, %arg1: memref<1x64xi32, #tpu.memory_space<vmem>>, %arg2: memref<4x8x64xf32, #tpu.memory_space<vmem>>, %arg3: memref<8x64xf32, #tpu.memory_space<vmem>>, %arg4: memref<8x64xi32, #tpu.memory_space<vmem>>) attributes {dimension_semantics = [#tpu.dimension_semantics<parallel>], iteration_bounds = array<i64: 1>, scalar_prefetch = 0 : i64, scratch_operands = 0 : i64, tpu.core_type = #tpu.core_type<tc>, window_params = [{pipeline_mode = #tpu.pipeline_mode<synchronous>, transform_indices = @transform_0, window_bounds = array<i64: 1, 64>}, {transform_indices = @transform_1, window_bounds = array<i64: 4, 8, 64>}, {transform_indices = @transform_2, window_bounds = array<i64: 8, 64>}, {transform_indices = @transform_3, window_bounds = array<i64: 8, 64>}]} {
    %c0 = arith.constant 0 : index
    %c0_0 = arith.constant 0 : index
    %c0_1 = arith.constant 0 : index
    %0 = vector.load %arg2[%c0, %c0_0, %c0_1] : memref<4x8x64xf32, #tpu.memory_space<vmem>>, vector<1x8x64xf32>
    %1 = vector.shape_cast %0 : vector<1x8x64xf32> to vector<8x64xf32>
    %c1 = arith.constant 1 : index
    %c0_2 = arith.constant 0 : index
    %c0_3 = arith.constant 0 : index
    %2 = vector.load %arg2[%c1, %c0_2, %c0_3] : memref<4x8x64xf32, #tpu.memory_space<vmem>>, vector<1x8x64xf32>
    %3 = vector.shape_cast %2 : vector<1x8x64xf32> to vector<8x64xf32>
    %c2 = arith.constant 2 : index
    %c0_4 = arith.constant 0 : index
    %c0_5 = arith.constant 0 : index
    %4 = vector.load %arg2[%c2, %c0_4, %c0_5] : memref<4x8x64xf32, #tpu.memory_space<vmem>>, vector<1x8x64xf32>
    %5 = vector.shape_cast %4 : vector<1x8x64xf32> to vector<8x64xf32>
    %c3 = arith.constant 3 : index
    %c0_6 = arith.constant 0 : index
    %c0_7 = arith.constant 0 : index
    %6 = vector.load %arg2[%c3, %c0_6, %c0_7] : memref<4x8x64xf32, #tpu.memory_space<vmem>>, vector<1x8x64xf32>
    %7 = vector.shape_cast %6 : vector<1x8x64xf32> to vector<8x64xf32>
    %8 = arith.maximumf %1, %3 : vector<8x64xf32>
    %9 = arith.maximumf %5, %7 : vector<8x64xf32>
    %10 = arith.maximumf %8, %9 : vector<8x64xf32>
    %c0_8 = arith.constant 0 : index
    %c0_9 = arith.constant 0 : index
    %11 = vector.load %arg1[%c0_8, %c0_9] : memref<1x64xi32, #tpu.memory_space<vmem>>, vector<1x64xi32>
    %12 = vector.shape_cast %11 : vector<1x64xi32> to vector<1x64xi32>
    %13 = vector.broadcast %12 : vector<1x64xi32> to vector<8x64xi32>
    %c1_i32 = arith.constant 1 : i32
    %14 = vector.broadcast %c1_i32 : i32 to vector<8x64xi32>
    %15 = arith.addi %13, %14 : vector<8x64xi32>
    %c16_i32 = arith.constant 16 : i32
    %16 = vector.broadcast %c16_i32 : i32 to vector<8x64xi32>
    %17 = arith.addi %13, %16 : vector<8x64xi32>
    %c17_i32 = arith.constant 17 : i32
    %18 = vector.broadcast %c17_i32 : i32 to vector<8x64xi32>
    %19 = arith.addi %13, %18 : vector<8x64xi32>
    %20 = arith.cmpf oeq, %1, %10 : vector<8x64xf32>
    %21 = arith.cmpf one, %1, %1 : vector<8x64xf32>
    %22 = arith.ori %20, %21 : vector<8x64xi1>
    %23 = arith.cmpf oeq, %3, %10 : vector<8x64xf32>
    %24 = arith.cmpf one, %3, %3 : vector<8x64xf32>
    %25 = arith.ori %23, %24 : vector<8x64xi1>
    %26 = arith.cmpf oeq, %5, %10 : vector<8x64xf32>
    %27 = arith.cmpf one, %5, %5 : vector<8x64xf32>
    %28 = arith.ori %26, %27 : vector<8x64xi1>
    %29 = arith.select %28, %17, %19 : vector<8x64xi1>, vector<8x64xi32>
    %30 = arith.select %25, %15, %29 : vector<8x64xi1>, vector<8x64xi32>
    %31 = arith.select %22, %13, %30 : vector<8x64xi1>, vector<8x64xi32>
    %c0_10 = arith.constant 0 : index
    %c0_11 = arith.constant 0 : index
    %32 = vector.load %arg3[%c0_10, %c0_11] : memref<8x64xf32, #tpu.memory_space<vmem>>, vector<8x64xf32>
    tpu.vector_store %arg3[%c0_10, %c0_11], %10 {strides = array<i32>} : memref<8x64xf32, #tpu.memory_space<vmem>>, vector<8x64xf32>,
    %c0_12 = arith.constant 0 : index
    %c0_13 = arith.constant 0 : index
    %33 = vector.load %arg4[%c0_12, %c0_13] : memref<8x64xi32, #tpu.memory_space<vmem>>, vector<8x64xi32>
    tpu.vector_store %arg4[%c0_12, %c0_13], %31 {strides = array<i32>} : memref<8x64xi32, #tpu.memory_space<vmem>>, vector<8x64xi32>,
    return
  }
  func.func @transform_0(%arg0: i32) -> (i32, i32) {
    %c0_i32 = arith.constant 0 : i32
    %c0_i32_0 = arith.constant 0 : i32
    %c0_i32_1 = arith.constant 0 : i32
    return %c0_i32, %c0_i32_0 : i32, i32
  }
  func.func @transform_1(%arg0: i32) -> (i32, i32, i32) {
    %c0_i32 = arith.constant 0 : i32
    %c0_i32_0 = arith.constant 0 : i32
    %c0_i32_1 = arith.constant 0 : i32
    return %c0_i32, %arg0, %c0_i32_0 : i32, i32, i32
  }
  func.func @transform_2(%arg0: i32) -> (i32, i32) {
    %c0_i32 = arith.constant 0 : i32
    %c0_i32_0 = arith.constant 0 : i32
    return %arg0, %c0_i32 : i32, i32
  }
  func.func @transform_3(%arg0: i32) -> (i32, i32) {
    %c0_i32 = arith.constant 0 : i32
    %c0_i32_0 = arith.constant 0 : i32
    return %arg0, %c0_i32 : i32, i32
  }
}

</mosaic_0001>

<bundles_post_ra>
// kernel: shrinker_forward.2
= control target key start
LH: loop header
LB: loop body
LE: loop exit
PB: predicated region body
PF: predicated region fallthrough
CT: control target
= control target key end

     0   :  { %v121_v1 = vlaneseq  ;;  %vm234_vm1 = vcmask 523264   ;;  %s330_s0 = inlined_call_operand.vmem [shape: s32[1,64], index: 0, kind: input, shape index: {}]   ;;  %s331_s1 = inlined_call_operand.vmem [shape: f32[1,8,64], index: 1, kind: input, shape index: {}]   ;;  %s332_s2 = inlined_call_operand.<no memory space> [shape: f32[], index: 2, kind: input, shape index: {}]   ;;  %s333_s3 = inlined_call_operand.vmem [shape: f32[1,8,64], index: 3, kind: input, shape index: {}]   ;;  %s334_s4 = inlined_call_operand.vmem [shape: f32[1,8,64], index: 4, kind: input, shape index: {}]   ;;  %s335_s5 = inlined_call_operand.vmem [shape: f32[1,8,64], index: 5, kind: input, shape index: {}]   ;;  %s336_s6 = inlined_call_operand.vmem [shape: f32[8,64], index: 6, kind: output, shape index: {0}]   ;;  %s337_s7 = inlined_call_operand.vmem [shape: s32[8,64], index: 7, kind: output, shape index: {1}]  }
   0x1   :  { %v13_v0 = vstv %s332_s2  ;;  %v111_v2 = vld [vmem:[%s331_s1] sm:$0xff] }
   0x2   :  { %v115_v3 = vld [vmem:[%s333_s3] sm:$0xff]  ;;  %v122_v6 = vand.u32 127, %v121_v1 }
   0x3   :  { %v119_v4 = vld [vmem:[%s334_s4] sm:$0xff] }
   0x4   :  { %v120_v5 = vld [vmem:[%s335_s5] sm:$0xff]  ;;  %vm124_vm0 = vcmp.lt.s32.totalorder %v122_v6, 64 }
   0x5   :  { %v125_v7 = vsel %vm124_vm0, %v120_v5, %v13_v0  ;;  %v145_v8 = vsel %vm124_vm0, %v119_v4, %v13_v0  ;;  %v166_v9 = vsel %vm124_vm0, %v115_v3, %v13_v0  ;;  %v187_v10 = vsel %vm124_vm0, %v111_v2, %v13_v0  ;;  %v263_v22 = vld [vmem:[%s330_s0] ss:$0 sm:$0xff] }
   0x6   :  { %v128_v11 = vmax.f32 %v125_v7, %v13_v0  ;;  %v148_v12 = vmax.f32 %v13_v0, %v145_v8  ;;  %v173_v13 = vmax.f32 %v13_v0, %v166_v9  ;;  %v198_v14 = vmax.f32 %v13_v0, %v187_v10 }
   0x7   :  { %v220_v24 = vadd.s32 16, %v263_v22  ;;  %v221_v25 = vadd.s32 17, %v263_v22  ;;  %v219_v26 = vadd.s32 1, %v263_v22 }
   0x8   :  { %v132_v15 = vmax.f32 %v128_v11, %v13_v0  ;;  %v152_v16 = vmax.f32 %v148_v12, %v13_v0  ;;  %v177_v17 = vmax.f32 %v173_v13, %v13_v0 }
   0xa   :  { %v136_v18 = vmax.f32 %v132_v15, %v13_v0  ;;  %v156_v19 = vmax.f32 %v152_v16, %v13_v0  ;;  %v212_v20 = vmax.f32 %v177_v17, %v198_v14  ;;  %vm229_vm7 = vcmp.ne.f32.partialorder %v177_v17, %v177_v17 }
   0xc   :  { %v211_v21 = vmax.f32 %v136_v18, %v156_v19  ;;  %vm223_vm2 = vcmp.ne.f32.partialorder %v136_v18, %v136_v18  ;;  %vm226_vm3 = vcmp.ne.f32.partialorder %v156_v19, %v156_v19 }
   0xe   :  { %v213_v23 = vmax.f32 %v211_v21, %v212_v20 }
  0x10   :  { %vm222_vm4 = vcmp.eq.f32.partialorder %v136_v18, %v213_v23  ;;  %vm225_vm5 = vcmp.eq.f32.partialorder %v156_v19, %v213_v23  ;;  %vm228_vm6 = vcmp.eq.f32.partialorder %v177_v17, %v213_v23  ;;  %235 = vst.msk [vmem:[%s336_s6] sm:$0xff] %vm234_vm1, %v213_v23 }
  0x11   :  { %vm224_vm8 = vmor %vm222_vm4, %vm223_vm2 }
  0x12   :  { %vm227_vm9 = vmor %vm225_vm5, %vm226_vm3 }
  0x13   :  { %vm230_vm10 = vmor %vm228_vm6, %vm229_vm7 }
  0x14   :  { %v231_v27 = vsel %vm230_vm10, %v220_v24, %v221_v25 }
  0x15   :  { %v232_v28 = vsel %vm227_vm9, %v219_v26, %v231_v27 }
  0x16   :  { %v233_v29 = vsel %vm224_vm8, %v263_v22, %v232_v28 }
  0x17   :  { %236 = vst.msk [vmem:[%s337_s7] sm:$0xff] %vm234_vm1, %v233_v29 }

</bundles_post_ra>
